<compile_context>
chip_gen: v7x
topology: tpu7x:2x2x1
jax: 0.10.0
libtpu: 0.0.40
codegen_flags: <defaults>
</compile_context>

<pallas_src>
import jax
import jax.numpy as jnp
from jax.experimental import pallas as pl
from jax.experimental.pallas import tpu as pltpu

_MiB = 1024 * 1024


# --------------------------------------------------------------------------
# Kernel bodies
# --------------------------------------------------------------------------
def _transpose2d_kernel(x_ref, o_ref):
    # x_ref: (tm, tn)  ->  o_ref: (tn, tm); pure on-chip 2-D transpose (XLU).
    o_ref[...] = x_ref[...].T


def _make_batched_transpose_kernel(gt: int):
    # (gt, M, N) -> (gt, N, M) as `gt` independent 2-D transposes.  `gt` is
    # kept small (<= 32) so the static unroll stays cheap; this avoids relying
    # on 3-D transpose lowering while still giving fat grid steps.
    def kernel(x_ref, o_ref):
        for g in range(gt):
            o_ref[g] = x_ref[g].T
    return kernel


# --------------------------------------------------------------------------
# Tiling heuristics
# --------------------------------------------------------------------------
def _vmem_capacity_bytes() -> int:
    try:
        return int(pltpu.get_tpu_info().vmem_capacity_bytes)
    except Exception:
        return 128 * _MiB  # conservative default (v5e/v6e class)


def _pick_tile(dim: int, cap: int, floor: int) -> int:
    """Tile for one axis: the full axis if it fits under `cap`, otherwise a
    multiple of 128 (preferring one that divides `dim` evenly so there is no
    padded remainder block), never below `floor`."""
    if dim <= cap or dim <= 128:
        return dim
    floor = min(max(128, floor), (dim // 128) * 128)
    hi = max(floor, (min(cap, dim) // 128) * 128)
    for t in range(hi, floor - 1, -128):
        if dim % t == 0:
            return t
    return hi


def _choose_blocks(G: int, M: int, N: int, itemsize: int, slab_budget: int):
    """Return (gt, tm, tn) block sizes for the (G, M, N) -> (G, N, M) transpose."""
    max_elems = max(128 * 8, slab_budget // itemsize)
    floor_n = 1024 if itemsize <= 2 else 512  # min N tile when N is tiled

    # 1) Full (M, N) slab fits: batch several G per grid step to amortize the
    #    fixed per-step overhead (review item: fatter steps, fewer DMAs).
    if M * N <= max_elems:
        gt = max(1, min(G, 32, max_elems // (M * N)))
        while G % gt:            # keep every block full (no padded batch rows)
            gt -= 1
        return gt, M, N

    # 2) Keep M full (contiguous output DMA) and tile N.
    if M * min(N, floor_n) <= max_elems:
        tn = _pick_tile(N, max_elems // M, floor_n)
        return 1, M, tn

    # 3) M alone exceeds the budget (e.g. huge spatial dims): tile both axes
    #    so 4 live double-buffered slabs stay within v7x's 64 MiB VMEM.
    tn = _pick_tile(N, max(128, floor_n), floor_n)
    tm = _pick_tile(M, max(128, max_elems // tn), 256)
    return 1, tm, tn


# --------------------------------------------------------------------------
# Grouped batched transpose: (G, M, N) -> (G, N, M)
# --------------------------------------------------------------------------
def _batched_transpose(x: jax.Array, slab_budget: int | None = None) -> jax.Array:
    G, M, N = x.shape
    itemsize = jnp.dtype(x.dtype).itemsize
    vmem_cap = _vmem_capacity_bytes()

    if slab_budget is None:
        # ~3-4 MiB slabs on 64-MiB-VMEM parts (v7x), ~6-8 MiB on 128-MiB parts.
        slab_budget = (7 * _MiB // 2) if vmem_cap <= 64 * _MiB else 7 * _MiB

    gt, tm, tn = _choose_blocks(G, M, N, itemsize, slab_budget)
    slab_bytes = gt * tm * tn * itemsize
    # 2x double-buffered input + 2x output slabs live, plus headroom; leave
    # margin below physical VMEM on v7x (48 MiB cap per review).
    vmem_limit = int(min(48 * _MiB if vmem_cap <= 64 * _MiB else 100 * _MiB,
                         max(16 * _MiB, 5 * slab_bytes)))

    cost = pl.CostEstimate(flops=0, transcendentals=0,
                           bytes_accessed=2 * G * M * N * itemsize)

    if gt > 1:
        grid = (G // gt,)
        in_specs = [pl.BlockSpec((gt, M, N), lambda i: (i, 0, 0))]
        out_specs = pl.BlockSpec((gt, N, M), lambda i: (i, 0, 0))
        kernel = _make_batched_transpose_kernel(gt)
        dim_sem = ("parallel",)
    else:
        grid = (G, pl.cdiv(M, tm), pl.cdiv(N, tn))
        in_specs = [pl.BlockSpec((None, tm, tn), lambda g, im, jn: (g, im, jn))]
        out_specs = pl.BlockSpec((None, tn, tm), lambda g, im, jn: (g, jn, im))
        kernel = _transpose2d_kernel
        dim_sem = ("parallel", "parallel", "parallel")

    return pl.pallas_call(
        kernel,
        out_shape=jax.ShapeDtypeStruct((G, N, M), x.dtype),
        grid_spec=pltpu.PrefetchScalarGridSpec(
            num_scalar_prefetch=0,
            grid=grid,
            in_specs=in_specs,
            out_specs=out_specs,
        ),
        compiler_params=pltpu.CompilerParams(
            dimension_semantics=dim_sem,
            vmem_limit_bytes=vmem_limit,
        ),
        cost_estimate=cost,
    )(x)


# --------------------------------------------------------------------------
# torch.permute equivalent (4-D, batch-leading, as used by swin_v2)
# --------------------------------------------------------------------------
def permute(x: jax.Array, dims) -> jax.Array:
    """Pallas equivalent of torch.permute(x, dims) for 4-D batch-leading dims."""
    dims = tuple(int(d) for d in dims)
    assert len(dims) == x.ndim and sorted(dims) == list(range(x.ndim))
    if dims == tuple(range(x.ndim)):
        return x

    # TODO(synk): permutations that move the batch axis are not used by swin_v2
    # (it only issues Permute([0,2,3,1]) / Permute([0,3,1,2])) and are not
    # implemented here.
    assert x.ndim == 4 and dims[0] == 0, "only 4-D batch-leading permutes"

    d0, d1, d2, d3 = x.shape
    if dims == (0, 2, 3, 1):          # NCHW -> NHWC (swin_v2 patch embed)
        y = _batched_transpose(x.reshape(d0, d1, d2 * d3))
        return y.reshape(d0, d2, d3, d1)
    if dims == (0, 3, 1, 2):          # NHWC -> NCHW (swin_v2 classifier head)
        y = _batched_transpose(x.reshape(d0, d1 * d2, d3))
        return y.reshape(d0, d3, d1, d2)
    if dims == (0, 1, 3, 2):          # swap last two; fold axis 1 into batch
        y = _batched_transpose(x.reshape(d0 * d1, d2, d3))
        return y.reshape(d0, d1, d3, d2)
    # TODO(synk): (0,2,1,3)/(0,3,2,1) could be single-pass (blocked copy /
    # 3-axis block transpose) per review, but they are unused by swin_v2; kept
    # as compositions of the proven grouped-transpose kernel for robustness.
    if dims == (0, 2, 1, 3):
        return permute(permute(x, (0, 2, 3, 1)), (0, 1, 3, 2))
    if dims == (0, 3, 2, 1):
        return permute(permute(x, (0, 1, 3, 2)), (0, 2, 3, 1))
    raise NotImplementedError(dims)


class Permute:
    """JAX/Pallas equivalent of the torchvision swin `Permute(dims)` module."""

    def __init__(self, dims):
        self.dims = tuple(int(d) for d in dims)

    def __call__(self, x: jax.Array) -> jax.Array:
        return permute(x, self.dims)


if __name__ == "__main__":
    key = jax.random.PRNGKey(0)
    # Small NCHW input consistent with a conv-stem activation in swin_v2.
    B, C, H, W = 2, 4, 16, 16
    x = jax.random.normal(key, (B, C, H, W), dtype=jnp.float32)

    # Permute([0, 2, 3, 1]) as used throughout swin_v2 (NCHW -> NHWC).
    y = jax.block_until_ready(Permute([0, 2, 3, 1])(x))
    y_ref = jnp.transpose(x, (0, 2, 3, 1))
    assert y.shape == y_ref.shape == (B, H, W, C)
    assert y.dtype == x.dtype
    assert jnp.array_equal(y, y_ref)

    # Permute([0, 3, 1, 2]) — the inverse layout change also used in swin_v2.
    z = jax.block_until_ready(Permute([0, 3, 1, 2])(y))
    assert z.shape == x.shape
    assert jnp.array_equal(z, x)

    # (0, 1, 3, 2): fold channels into the batch group, swap the spatial axes.
    w = jax.block_until_ready(permute(x, (0, 1, 3, 2)))
    assert jnp.array_equal(w, jnp.transpose(x, (0, 1, 3, 2)))

    # Exercise the N-tiled multi-block grid path on a small tensor by forcing
    # a tiny slab budget (checks the tiled 2-D transpose kernel end to end).
    x2 = jax.random.normal(jax.random.PRNGKey(1), (2, 8, 32 * 48), jnp.float32)
    y2 = jax.block_until_ready(_batched_transpose(x2, slab_budget=16 * 1024))
    assert jnp.array_equal(y2, jnp.swapaxes(x2, 1, 2))

    print("KERNEL_OK")
</pallas_src>

<mosaic_0001>
module attributes {stable_mosaic.version = 11 : i64} {
  func.func @kernel(%arg0: i32, %arg1: memref<2x4x256xf32, #tpu.memory_space<vmem>>, %arg2: memref<2x256x4xf32, #tpu.memory_space<vmem>>) attributes {dimension_semantics = [#tpu.dimension_semantics<parallel>], iteration_bounds = array<i64: 1>, scalar_prefetch = 0 : i64, scratch_operands = 0 : i64, tpu.core_type = #tpu.core_type<tc>, window_params = [{transform_indices = @transform_0, window_bounds = array<i64: 2, 4, 256>}, {transform_indices = @transform_1, window_bounds = array<i64: 2, 256, 4>}]} {
    %c0 = arith.constant 0 : index
    %c0_0 = arith.constant 0 : index
    %c0_1 = arith.constant 0 : index
    %0 = vector.load %arg1[%c0, %c0_0, %c0_1] : memref<2x4x256xf32, #tpu.memory_space<vmem>>, vector<1x4x256xf32>
    %1 = vector.shape_cast %0 : vector<1x4x256xf32> to vector<4x256xf32>
    %2 = tpu.transpose %1, [1, 0] : vector<4x256xf32> -> vector<256x4xf32>
    %c0_2 = arith.constant 0 : index
    %c0_3 = arith.constant 0 : index
    %c0_4 = arith.constant 0 : index
    %3 = vector.load %arg2[%c0_2, %c0_3, %c0_4] : memref<2x256x4xf32, #tpu.memory_space<vmem>>, vector<1x256x4xf32>
    %4 = vector.shape_cast %3 : vector<1x256x4xf32> to vector<256x4xf32>
    %5 = vector.shape_cast %2 : vector<256x4xf32> to vector<1x256x4xf32>
    tpu.vector_store %arg2[%c0_2, %c0_3, %c0_4], %5 {strides = array<i32>} : memref<2x256x4xf32, #tpu.memory_space<vmem>>, vector<1x256x4xf32>,
    %c1 = arith.constant 1 : index
    %c0_5 = arith.constant 0 : index
    %c0_6 = arith.constant 0 : index
    %6 = vector.load %arg1[%c1, %c0_5, %c0_6] : memref<2x4x256xf32, #tpu.memory_space<vmem>>, vector<1x4x256xf32>
    %7 = vector.shape_cast %6 : vector<1x4x256xf32> to vector<4x256xf32>
    %8 = tpu.transpose %7, [1, 0] : vector<4x256xf32> -> vector<256x4xf32>
    %c1_7 = arith.constant 1 : index
    %c0_8 = arith.constant 0 : index
    %c0_9 = arith.constant 0 : index
    %9 = vector.load %arg2[%c1_7, %c0_8, %c0_9] : memref<2x256x4xf32, #tpu.memory_space<vmem>>, vector<1x256x4xf32>
    %10 = vector.shape_cast %9 : vector<1x256x4xf32> to vector<256x4xf32>
    %11 = vector.shape_cast %8 : vector<256x4xf32> to vector<1x256x4xf32>
    tpu.vector_store %arg2[%c1_7, %c0_8, %c0_9], %11 {strides = array<i32>} : memref<2x256x4xf32, #tpu.memory_space<vmem>>, vector<1x256x4xf32>,
    return
  }
  func.func @transform_0(%arg0: i32) -> (i32, i32, i32) {
    %c0_i32 = arith.constant 0 : i32
    %c0_i32_0 = arith.constant 0 : i32
    %c0_i32_1 = arith.constant 0 : i32
    return %arg0, %c0_i32, %c0_i32_0 : i32, i32, i32
  }
  func.func @transform_1(%arg0: i32) -> (i32, i32, i32) {
    %c0_i32 = arith.constant 0 : i32
    %c0_i32_0 = arith.constant 0 : i32
    %c0_i32_1 = arith.constant 0 : i32
    return %arg0, %c0_i32, %c0_i32_0 : i32, i32, i32
  }
}

</mosaic_0001>

<bundles_post_ra>
// kernel: tpu_custom_call.1
= control target key start
LH: loop header
LB: loop body
LE: loop exit
PB: predicated region body
PF: predicated region fallthrough
CT: control target
= control target key end

     0   :  { %6 = vsyncpa [#allocation3], 0  ;;  %s292_s6 = smov [#allocation2]   ;;  %s573_s0 = inlined_call_operand.hbm [shape: f32[2,4,256], index: 0, kind: input, shape index: {}]   ;;  %s574_s1 = inlined_call_operand.vmem [shape: f32[2,256,4], index: 1, kind: output, shape index: {}]  }
   0x1   :  { %s12_s7 = sshll.u32 %s292_s6, 4  ;;  %s268_s10 = scalar_lea.hbm %s573_s0, 256  ;;  %s13_s7 = int_to_ptr.vmem [resolvable:$true] %s12_s7 }
   0x2   :  { %p269_p0 = scmp.ne.s32.totalorder %s573_s0, %s268_s10  ;;  %p272_p1 = scmp.lt.u32.totalorder %s268_s10, %s573_s0 }
   0x4   :  { %p274_p2 = pnand %p272_p1, %p269_p0 }
   0x6   :  { %277 = shalt.err (!%p274_p2)
}
   0x7   :  { %s278_s15 = scalar_lea.vmem %s13_s7, 256  ;;  %p283_p4 = scmp.lt.s32.totalorder %s13_s7, %s13_s7 }
   0x8   :  { %p279_p3 = scmp.ne.s32.totalorder %s13_s7, %s278_s15  ;;  %p284_p5 = scmp.lt.s32.totalorder %s278_s15, %s278_s15 }
   0xa   :  { %p285_p6 = por %p284_p5, %p283_p4 }
   0xc   :  { %p286_p7 = pnand %p285_p6, %p279_p3 }
   0xe   :  { %289 = shalt.err (!%p286_p7)
}
   0xf   :  { %s293_s16 = smov 128   ;;  %s294_s17 = smov 8  }
  0x10   :  { %18 = dma.hbm_to_vmem [thread:$0]  %s573_s0, 256, %s13_s7, [#allocation3], %s293_s16, %s293_s16, %s294_s17  }
  0x11   :  { %290 = dma.done.wait [#allocation3], 256  }
  0x12   :  { %291 = vsyncadd [#allocation3], 4294967040  ;;  %v124_v0 = vld [vmem:[#allocation2 + $0x8] sm:$0xff]  ;;  %v22_v1 = vld [vmem:[#allocation2] sm:$0xff]  ;;  %vm90_vm0 = vcmask 31744  }
  0x13   :  { %128 = vxpose.xlu1.b32.start.end [1/1] (short) %v124_v0, 128  ;;  %26 = vxpose.xlu0.b32.start.end [1/1] (short) %v22_v1, 128  ;;  %v126_v2 = vcombine.high %v124_v0, %v124_v0  ;;  %v24_v3 = vcombine.high %v22_v1, %v22_v1 }
  0x50   :  { %160 = vxpose.xlu1.b32.start.end [1/1] (short) %v126_v2, 128  ;;  %58 = vxpose.xlu0.b32.start.end [1/1] (short) %v24_v3, 128 }
  0x93   :  { %v144_v4 = vpop.trf.xlu1  ;;  %v42_v5 = vpop.trf.xlu0 }
  0x94   :  { %230 = vst.msk [vmem:[%s574_s1 + $0x100] sm:$0xff] %vm90_vm0, %v144_v4  ;;  %91 = vst.msk [vmem:[%s574_s1] sm:$0xff] %vm90_vm0, %v42_v5 }
  0x97   :  { %v145_v6 = vpop.trf.xlu1  ;;  %v43_v7 = vpop.trf.xlu0 }
  0x98   :  { %231 = vst.msk [vmem:[%s574_s1 + $0x108] sm:$0xff] %vm90_vm0, %v145_v6  ;;  %92 = vst.msk [vmem:[%s574_s1 + $0x8] sm:$0xff] %vm90_vm0, %v43_v7 }
  0x9b   :  { %v146_v8 = vpop.trf.xlu1  ;;  %v44_v9 = vpop.trf.xlu0 }
  0x9c   :  { %232 = vst.msk [vmem:[%s574_s1 + $0x110] sm:$0xff] %vm90_vm0, %v146_v8  ;;  %93 = vst.msk [vmem:[%s574_s1 + $0x10] sm:$0xff] %vm90_vm0, %v44_v9 }
  0x9f   :  { %v147_v10 = vpop.trf.xlu1  ;;  %v45_v11 = vpop.trf.xlu0 }
  0xa0   :  { %233 = vst.msk [vmem:[%s574_s1 + $0x118] sm:$0xff] %vm90_vm0, %v147_v10  ;;  %94 = vst.msk [vmem:[%s574_s1 + $0x18] sm:$0xff] %vm90_vm0, %v45_v11 }
  0xa3   :  { %v148_v12 = vpop.trf.xlu1  ;;  %v46_v13 = vpop.trf.xlu0 }
  0xa4   :  { %234 = vst.msk [vmem:[%s574_s1 + $0x120] sm:$0xff] %vm90_vm0, %v148_v12  ;;  %95 = vst.msk [vmem:[%s574_s1 + $0x20] sm:$0xff] %vm90_vm0, %v46_v13 }
  0xa7   :  { %v149_v14 = vpop.trf.xlu1  ;;  %v47_v15 = vpop.trf.xlu0 }
  0xa8   :  { %235 = vst.msk [vmem:[%s574_s1 + $0x128] sm:$0xff] %vm90_vm0, %v149_v14  ;;  %96 = vst.msk [vmem:[%s574_s1 + $0x28] sm:$0xff] %vm90_vm0, %v47_v15 }
  0xab   :  { %v150_v16 = vpop.trf.xlu1  ;;  %v48_v17 = vpop.trf.xlu0 }
  0xac   :  { %236 = vst.msk [vmem:[%s574_s1 + $0x130] sm:$0xff] %vm90_vm0, %v150_v16  ;;  %97 = vst.msk [vmem:[%s574_s1 + $0x30] sm:$0xff] %vm90_vm0, %v48_v17 }
  0xaf   :  { %v151_v18 = vpop.trf.xlu1  ;;  %v49_v19 = vpop.trf.xlu0 }
  0xb0   :  { %237 = vst.msk [vmem:[%s574_s1 + $0x138] sm:$0xff] %vm90_vm0, %v151_v18  ;;  %98 = vst.msk [vmem:[%s574_s1 + $0x38] sm:$0xff] %vm90_vm0, %v49_v19 }
  0xb3   :  { %v152_v20 = vpop.trf.xlu1  ;;  %v50_v21 = vpop.trf.xlu0 }
  0xb4   :  { %238 = vst.msk [vmem:[%s574_s1 + $0x140] sm:$0xff] %vm90_vm0, %v152_v20  ;;  %99 = vst.msk [vmem:[%s574_s1 + $0x40] sm:$0xff] %vm90_vm0, %v50_v21 }
  0xb7   :  { %v153_v22 = vpop.trf.xlu1  ;;  %v51_v23 = vpop.trf.xlu0 }
  0xb8   :  { %239 = vst.msk [vmem:[%s574_s1 + $0x148] sm:$0xff] %vm90_vm0, %v153_v22  ;;  %100 = vst.msk [vmem:[%s574_s1 + $0x48] sm:$0xff] %vm90_vm0, %v51_v23 }
  0xbb   :  { %v154_v24 = vpop.trf.xlu1  ;;  %v52_v25 = vpop.trf.xlu0 }
  0xbc   :  { %240 = vst.msk [vmem:[%s574_s1 + $0x150] sm:$0xff] %vm90_vm0, %v154_v24  ;;  %101 = vst.msk [vmem:[%s574_s1 + $0x50] sm:$0xff] %vm90_vm0, %v52_v25 }
  0xbf   :  { %v155_v26 = vpop.trf.xlu1  ;;  %v53_v27 = vpop.trf.xlu0 }
  0xc0   :  { %241 = vst.msk [vmem:[%s574_s1 + $0x158] sm:$0xff] %vm90_vm0, %v155_v26  ;;  %102 = vst.msk [vmem:[%s574_s1 + $0x58] sm:$0xff] %vm90_vm0, %v53_v27 }
  0xc3   :  { %v156_v28 = vpop.trf.xlu1  ;;  %v54_v29 = vpop.trf.xlu0 }
  0xc4   :  { %242 = vst.msk [vmem:[%s574_s1 + $0x160] sm:$0xff] %vm90_vm0, %v156_v28  ;;  %103 = vst.msk [vmem:[%s574_s1 + $0x60] sm:$0xff] %vm90_vm0, %v54_v29 }
  0xc7   :  { %v157_v30 = vpop.trf.xlu1  ;;  %v55_v31 = vpop.trf.xlu0 }
  0xc8   :  { %243 = vst.msk [vmem:[%s574_s1 + $0x168] sm:$0xff] %vm90_vm0, %v157_v30  ;;  %104 = vst.msk [vmem:[%s574_s1 + $0x68] sm:$0xff] %vm90_vm0, %v55_v31 }
  0xcb   :  { %v158_v32 = vpop.trf.xlu1  ;;  %v56_v33 = vpop.trf.xlu0 }
  0xcc   :  { %244 = vst.msk [vmem:[%s574_s1 + $0x170] sm:$0xff] %vm90_vm0, %v158_v32  ;;  %105 = vst.msk [vmem:[%s574_s1 + $0x70] sm:$0xff] %vm90_vm0, %v56_v33 }
  0xcf   :  { %v159_v34 = vpop.trf.xlu1  ;;  %v57_v35 = vpop.trf.xlu0 }
  0xd0   :  { %245 = vst.msk [vmem:[%s574_s1 + $0x178] sm:$0xff] %vm90_vm0, %v159_v34  ;;  %106 = vst.msk [vmem:[%s574_s1 + $0x78] sm:$0xff] %vm90_vm0, %v57_v35 }
  0xd3   :  { %v176_v36 = vpop.trf.xlu1  ;;  %v74_v37 = vpop.trf.xlu0 }
  0xd4   :  { %246 = vst.msk [vmem:[%s574_s1 + $0x180] sm:$0xff] %vm90_vm0, %v176_v36  ;;  %107 = vst.msk [vmem:[%s574_s1 + $0x80] sm:$0xff] %vm90_vm0, %v74_v37 }
  0xd7   :  { %v177_v38 = vpop.trf.xlu1  ;;  %v75_v39 = vpop.trf.xlu0 }
  0xd8   :  { %247 = vst.msk [vmem:[%s574_s1 + $0x188] sm:$0xff] %vm90_vm0, %v177_v38  ;;  %108 = vst.msk [vmem:[%s574_s1 + $0x88] sm:$0xff] %vm90_vm0, %v75_v39 }
  0xdb   :  { %v178_v40 = vpop.trf.xlu1  ;;  %v76_v41 = vpop.trf.xlu0 }
  0xdc   :  { %248 = vst.msk [vmem:[%s574_s1 + $0x190] sm:$0xff] %vm90_vm0, %v178_v40  ;;  %109 = vst.msk [vmem:[%s574_s1 + $0x90] sm:$0xff] %vm90_vm0, %v76_v41 }
  0xdf   :  { %v179_v42 = vpop.trf.xlu1  ;;  %v77_v43 = vpop.trf.xlu0 }
  0xe0   :  { %249 = vst.msk [vmem:[%s574_s1 + $0x198] sm:$0xff] %vm90_vm0, %v179_v42  ;;  %110 = vst.msk [vmem:[%s574_s1 + $0x98] sm:$0xff] %vm90_vm0, %v77_v43 }
  0xe3   :  { %v180_v44 = vpop.trf.xlu1  ;;  %v78_v45 = vpop.trf.xlu0 }
  0xe4   :  { %250 = vst.msk [vmem:[%s574_s1 + $0x1a0] sm:$0xff] %vm90_vm0, %v180_v44  ;;  %111 = vst.msk [vmem:[%s574_s1 + $0xa0] sm:$0xff] %vm90_vm0, %v78_v45 }
  0xe7   :  { %v181_v46 = vpop.trf.xlu1  ;;  %v79_v47 = vpop.trf.xlu0 }
  0xe8   :  { %251 = vst.msk [vmem:[%s574_s1 + $0x1a8] sm:$0xff] %vm90_vm0, %v181_v46  ;;  %112 = vst.msk [vmem:[%s574_s1 + $0xa8] sm:$0xff] %vm90_vm0, %v79_v47 }
  0xeb   :  { %v182_v48 = vpop.trf.xlu1  ;;  %v80_v49 = vpop.trf.xlu0 }
  0xec   :  { %252 = vst.msk [vmem:[%s574_s1 + $0x1b0] sm:$0xff] %vm90_vm0, %v182_v48  ;;  %113 = vst.msk [vmem:[%s574_s1 + $0xb0] sm:$0xff] %vm90_vm0, %v80_v49 }
  0xef   :  { %v183_v50 = vpop.trf.xlu1  ;;  %v81_v51 = vpop.trf.xlu0 }
  0xf0   :  { %253 = vst.msk [vmem:[%s574_s1 + $0x1b8] sm:$0xff] %vm90_vm0, %v183_v50  ;;  %114 = vst.msk [vmem:[%s574_s1 + $0xb8] sm:$0xff] %vm90_vm0, %v81_v51 }
  0xf3   :  { %v184_v52 = vpop.trf.xlu1  ;;  %v82_v53 = vpop.trf.xlu0 }
  0xf4   :  { %254 = vst.msk [vmem:[%s574_s1 + $0x1c0] sm:$0xff] %vm90_vm0, %v184_v52  ;;  %115 = vst.msk [vmem:[%s574_s1 + $0xc0] sm:$0xff] %vm90_vm0, %v82_v53 }
  0xf7   :  { %v185_v54 = vpop.trf.xlu1  ;;  %v83_v55 = vpop.trf.xlu0 }
  0xf8   :  { %255 = vst.msk [vmem:[%s574_s1 + $0x1c8] sm:$0xff] %vm90_vm0, %v185_v54  ;;  %116 = vst.msk [vmem:[%s574_s1 + $0xc8] sm:$0xff] %vm90_vm0, %v83_v55 }
  0xfb   :  { %v186_v56 = vpop.trf.xlu1  ;;  %v84_v57 = vpop.trf.xlu0 }
  0xfc   :  { %256 = vst.msk [vmem:[%s574_s1 + $0x1d0] sm:$0xff] %vm90_vm0, %v186_v56  ;;  %117 = vst.msk [vmem:[%s574_s1 + $0xd0] sm:$0xff] %vm90_vm0, %v84_v57 }
  0xff   :  { %v187_v58 = vpop.trf.xlu1  ;;  %v85_v59 = vpop.trf.xlu0 }
 0x100   :  { %257 = vst.msk [vmem:[%s574_s1 + $0x1d8] sm:$0xff] %vm90_vm0, %v187_v58  ;;  %118 = vst.msk [vmem:[%s574_s1 + $0xd8] sm:$0xff] %vm90_vm0, %v85_v59 }
 0x103   :  { %v188_v60 = vpop.trf.xlu1  ;;  %v86_v61 = vpop.trf.xlu0 }
 0x104   :  { %258 = vst.msk [vmem:[%s574_s1 + $0x1e0] sm:$0xff] %vm90_vm0, %v188_v60  ;;  %119 = vst.msk [vmem:[%s574_s1 + $0xe0] sm:$0xff] %vm90_vm0, %v86_v61 }
 0x107   :  { %v189_v62 = vpop.trf.xlu1  ;;  %v87_v63 = vpop.trf.xlu0 }
 0x108   :  { %259 = vst.msk [vmem:[%s574_s1 + $0x1e8] sm:$0xff] %vm90_vm0, %v189_v62  ;;  %120 = vst.msk [vmem:[%s574_s1 + $0xe8] sm:$0xff] %vm90_vm0, %v87_v63 }
 0x10b   :  { %v190_v0 = vpop.trf.xlu1  ;;  %v88_v1 = vpop.trf.xlu0 }
 0x10c   :  { %260 = vst.msk [vmem:[%s574_s1 + $0x1f0] sm:$0xff] %vm90_vm0, %v190_v0  ;;  %121 = vst.msk [vmem:[%s574_s1 + $0xf0] sm:$0xff] %vm90_vm0, %v88_v1 }
 0x10f   :  { %v191_v2 = vpop.trf.xlu1  ;;  %v89_v3 = vpop.trf.xlu0 }
 0x110   :  { %261 = vst.msk [vmem:[%s574_s1 + $0x1f8] sm:$0xff] %vm90_vm0, %v191_v2  ;;  %122 = vst.msk [vmem:[%s574_s1 + $0xf8] sm:$0xff] %vm90_vm0, %v89_v3 }
 0x111   :  { %229 = vsyncpa [#allocation3], 1 }

</bundles_post_ra>
